<compile_context>
chip_gen: v7x
topology: tpu7x:2x2x1
jax: 0.10.0
libtpu: 0.0.40
codegen_flags: <defaults>
</compile_context>

<pallas_src>
import math
from functools import partial

import jax
import jax.numpy as jnp
from jax.experimental import pallas as pl
from jax.experimental.pallas import tpu as pltpu


def _mha_kernel(x_q_ref, x_kv_ref, gamma_ref, beta_ref,
                wq_ref, bq_ref, wkv_ref, bkv_ref, wo_ref, bo_ref,
                o_ref, *, num_heads, head_dim, eps):
    E = num_heads * head_dim
    gamma = gamma_ref[...]          # (1, E) f32
    beta = beta_ref[...]            # (1, E) f32

    def layernorm(x):
        x = x.astype(jnp.float32)
        mean = jnp.mean(x, axis=-1, keepdims=True)
        var = jnp.mean((x - mean) ** 2, axis=-1, keepdims=True)
        return (x - mean) * jax.lax.rsqrt(var + eps) * gamma + beta

    # Query rows of this grid step + the full sequence (needed for K/V).
    xn_q = layernorm(x_q_ref[0]).astype(jnp.bfloat16)      # (tq, E)
    xn_kv = layernorm(x_kv_ref[0]).astype(jnp.bfloat16)    # (S, E)

    # Fused, lane-dense projections (bf16 operands, f32 accumulation).
    # Wq / bq are pre-scaled by 1/sqrt(head_dim) host-side.
    q = jnp.dot(xn_q, wq_ref[...],
                preferred_element_type=jnp.float32) + bq_ref[...]      # (tq, E)
    kv = jnp.dot(xn_kv, wkv_ref[...],
                 preferred_element_type=jnp.float32) + bkv_ref[...]    # (S, 2E)
    k = kv[:, :E]
    v = kv[:, E:].astype(jnp.bfloat16)

    # Per-head attention (num_heads is a static Python int).
    heads = []
    for h in range(num_heads):
        lo = h * head_dim
        hi = lo + head_dim
        qh = q[:, lo:hi].astype(jnp.bfloat16)      # (tq, hd)
        kh = k[:, lo:hi].astype(jnp.bfloat16)      # (S, hd)
        vh = v[:, lo:hi]                           # (S, hd) bf16

        # scores (scale already folded into Wq/bq); contract on head_dim.
        s = jax.lax.dot_general(qh, kh, (((1,), (1,)), ((), ())),
                                preferred_element_type=jnp.float32)    # (tq, S)
        s = s - jnp.max(s, axis=-1, keepdims=True)
        p = jnp.exp(s)
        l = jnp.sum(p, axis=-1, keepdims=True)                         # (tq, 1)
        oh = jnp.dot(p.astype(jnp.bfloat16), vh,
                     preferred_element_type=jnp.float32)               # (tq, hd)
        # Normalize the small (tq, hd) head output instead of the (tq, S) probs.
        heads.append(oh * pl.reciprocal(l, approx=True))

    attn = jnp.concatenate(heads, axis=-1).astype(jnp.bfloat16)        # (tq, E)
    out = jnp.dot(attn, wo_ref[...],
                  preferred_element_type=jnp.float32) + bo_ref[...]    # (tq, E)
    o_ref[0] = out.astype(o_ref.dtype)


def multi_head_attention(x, params, num_heads, tq=None):
    """params = (gamma, beta, in_proj_weight(3E,E), in_proj_bias(3E,),
                 out_proj_weight(E,E), out_proj_bias(E,))"""
    B, S, E = x.shape
    hd = E // num_heads
    gamma, beta, w_in, b_in, w_out, b_out = params

    scale = 1.0 / math.sqrt(hd)

    # Lane-dense, pre-transposed weights (bf16 for the MXU).
    # Fold 1/sqrt(head_dim) into the Q projection.
    wq = (w_in[:E].T * scale).astype(jnp.bfloat16)                 # (E, E)
    wkv = w_in[E:].T.astype(jnp.bfloat16)                          # (E, 2E)
    bq = (b_in[:E] * scale).reshape(1, E).astype(jnp.float32)
    bkv = b_in[E:].reshape(1, 2 * E).astype(jnp.float32)
    wo = w_out.T.astype(jnp.bfloat16)                              # (E, E)
    bo = b_out.reshape(1, E).astype(jnp.float32)
    g2 = gamma.reshape(1, E).astype(jnp.float32)
    b2 = beta.reshape(1, E).astype(jnp.float32)

    # Query-tile size: full sequence when small / not 128-divisible, else 128.
    if tq is None:
        tq = S if (S <= 128 or S % 128 != 0) else 128
    nq = S // tq

    def const_spec(a):
        return pl.BlockSpec(a.shape, lambda b, qi: (0,) * a.ndim)

    kernel = partial(_mha_kernel, num_heads=num_heads, head_dim=hd, eps=1e-5)
    return pl.pallas_call(
        kernel,
        out_shape=jax.ShapeDtypeStruct((B, S, E), x.dtype),
        grid=(B, nq),
        in_specs=[
            pl.BlockSpec((1, tq, E), lambda b, qi: (b, qi, 0)),    # query rows
            pl.BlockSpec((1, S, E), lambda b, qi: (b, 0, 0)),      # full seq for K/V
            const_spec(g2), const_spec(b2),                        # layernorm
            const_spec(wq), const_spec(bq),                        # Q proj (pre-scaled)
            const_spec(wkv), const_spec(bkv),                      # K|V proj
            const_spec(wo), const_spec(bo),                        # out proj
        ],
        out_specs=pl.BlockSpec((1, tq, E), lambda b, qi: (b, qi, 0)),
        compiler_params=pltpu.CompilerParams(
            dimension_semantics=("parallel", "parallel")),
    )(x, x, g2, b2, wq, bq, wkv, bkv, wo, bo)


def reference(x, params, num_heads):
    gamma, beta, w_in, b_in, w_out, b_out = params
    B, S, E = x.shape
    hd = E // num_heads
    mean = x.mean(-1, keepdims=True)
    var = ((x - mean) ** 2).mean(-1, keepdims=True)
    xn = (x - mean) / jnp.sqrt(var + 1e-5) * gamma + beta
    qkv = xn @ w_in.T + b_in
    q, k, v = jnp.split(qkv, 3, axis=-1)
    heads = lambda t: t.reshape(B, S, num_heads, hd).transpose(0, 2, 1, 3)
    q, k, v = heads(q), heads(k), heads(v)
    s = (q @ k.transpose(0, 1, 3, 2)) / math.sqrt(hd)
    p = jax.nn.softmax(s, axis=-1)
    o = (p @ v).transpose(0, 2, 1, 3).reshape(B, S, E)
    return o @ w_out.T + b_out


if __name__ == "__main__":
    # Small shapes consistent with the module (scaled-down embedding_dim / num_heads).
    B, S, E, H = 2, 8, 32, 4

    key = jax.random.PRNGKey(0)
    kx, k1, k2, k3, k4 = jax.random.split(key, 5)

    x = jax.random.normal(kx, (B, S, E), dtype=jnp.float32)

    # Deterministic synthetic parameters (shapes follow nn.LayerNorm + nn.MultiheadAttention).
    gamma = jnp.ones((E,), jnp.float32)
    beta = jnp.zeros((E,), jnp.float32)
    in_proj_weight = 0.1 * jax.random.normal(k1, (3 * E, E), dtype=jnp.float32)
    in_proj_bias = 0.1 * jax.random.normal(k2, (3 * E,), dtype=jnp.float32)
    out_proj_weight = 0.1 * jax.random.normal(k3, (E, E), dtype=jnp.float32)
    out_proj_bias = 0.1 * jax.random.normal(k4, (E,), dtype=jnp.float32)
    params = (gamma, beta, in_proj_weight, in_proj_bias, out_proj_weight, out_proj_bias)

    out = multi_head_attention(x, params, H)
    out = jax.block_until_ready(out)

    ref = reference(x, params, H)
    assert out.shape == (B, S, E) and out.dtype == x.dtype
    # bf16 MXU operands -> loosened tolerance vs the f32 reference (per review).
    assert jnp.allclose(out, ref, atol=2e-2, rtol=2e-2), "mismatch vs reference"

    print("KERNEL_OK")
</pallas_src>

<mosaic_0001>
module attributes {stable_mosaic.version = 11 : i64} {
  func.func @_mha_kernel(%arg0: i32, %arg1: i32, %arg2: memref<1x8x32xf32, #tpu.memory_space<vmem>>, %arg3: memref<1x8x32xf32, #tpu.memory_space<vmem>>, %arg4: memref<1x32xf32, #tpu.memory_space<vmem>>, %arg5: memref<1x32xf32, #tpu.memory_space<vmem>>, %arg6: memref<32x32xbf16, #tpu.memory_space<vmem>>, %arg7: memref<1x32xf32, #tpu.memory_space<vmem>>, %arg8: memref<32x64xbf16, #tpu.memory_space<vmem>>, %arg9: memref<1x64xf32, #tpu.memory_space<vmem>>, %arg10: memref<32x32xbf16, #tpu.memory_space<vmem>>, %arg11: memref<1x32xf32, #tpu.memory_space<vmem>>, %arg12: memref<1x8x32xf32, #tpu.memory_space<vmem>>) attributes {dimension_semantics = [#tpu.dimension_semantics<parallel>, #tpu.dimension_semantics<parallel>], iteration_bounds = array<i64: 2, 1>, scalar_prefetch = 0 : i64, scratch_operands = 0 : i64, tpu.core_type = #tpu.core_type<tc>, window_params = [{transform_indices = @transform_0, window_bounds = array<i64: 1, 8, 32>}, {transform_indices = @transform_1, window_bounds = array<i64: 1, 8, 32>}, {pipeline_mode = #tpu.pipeline_mode<synchronous>, transform_indices = @transform_2, window_bounds = array<i64: 1, 32>}, {pipeline_mode = #tpu.pipeline_mode<synchronous>, transform_indices = @transform_3, window_bounds = array<i64: 1, 32>}, {pipeline_mode = #tpu.pipeline_mode<synchronous>, transform_indices = @transform_4, window_bounds = array<i64: 32, 32>}, {pipeline_mode = #tpu.pipeline_mode<synchronous>, transform_indices = @transform_5, window_bounds = array<i64: 1, 32>}, {pipeline_mode = #tpu.pipeline_mode<synchronous>, transform_indices = @transform_6, window_bounds = array<i64: 32, 64>}, {pipeline_mode = #tpu.pipeline_mode<synchronous>, transform_indices = @transform_7, window_bounds = array<i64: 1, 64>}, {pipeline_mode = #tpu.pipeline_mode<synchronous>, transform_indices = @transform_8, window_bounds = array<i64: 32, 32>}, {pipeline_mode = #tpu.pipeline_mode<synchronous>, transform_indices = @transform_9, window_bounds = array<i64: 1, 32>}, {transform_indices = @transform_10, window_bounds = array<i64: 1, 8, 32>}]} {
    %c0 = arith.constant 0 : index
    %c0_0 = arith.constant 0 : index
    %0 = vector.load %arg4[%c0, %c0_0] : memref<1x32xf32, #tpu.memory_space<vmem>>, vector<1x32xf32>
    %c0_1 = arith.constant 0 : index
    %c0_2 = arith.constant 0 : index
    %1 = vector.load %arg5[%c0_1, %c0_2] : memref<1x32xf32, #tpu.memory_space<vmem>>, vector<1x32xf32>
    %c0_3 = arith.constant 0 : index
    %c0_4 = arith.constant 0 : index
    %c0_5 = arith.constant 0 : index
    %2 = vector.load %arg2[%c0_3, %c0_4, %c0_5] : memref<1x8x32xf32, #tpu.memory_space<vmem>>, vector<1x8x32xf32>
    %3 = vector.shape_cast %2 : vector<1x8x32xf32> to vector<8x32xf32>
    %cst = arith.constant dense<0.000000e+00> : vector<8xf32>
    %4 = vector.multi_reduction <add>, %3, %cst [1] : vector<8x32xf32> to vector<8xf32>
    %5 = vector.shape_cast %4 : vector<8xf32> to vector<8x1xf32>
    %cst_6 = arith.constant 3.200000e+01 : f32
    %6 = vector.broadcast %cst_6 : f32 to vector<8x1xf32>
    %7 = arith.divf %5, %6 : vector<8x1xf32>
    %8 = vector.broadcast %7 : vector<8x1xf32> to vector<8x32xf32>
    %9 = arith.subf %3, %8 : vector<8x32xf32>
    %10 = arith.mulf %9, %9 : vector<8x32xf32>
    %cst_7 = arith.constant dense<0.000000e+00> : vector<8xf32>
    %11 = vector.multi_reduction <add>, %10, %cst_7 [1] : vector<8x32xf32> to vector<8xf32>
    %12 = vector.shape_cast %11 : vector<8xf32> to vector<8x1xf32>
    %cst_8 = arith.constant 3.200000e+01 : f32
    %13 = vector.broadcast %cst_8 : f32 to vector<8x1xf32>
    %14 = arith.divf %12, %13 : vector<8x1xf32>
    %15 = vector.broadcast %7 : vector<8x1xf32> to vector<8x32xf32>
    %16 = arith.subf %3, %15 : vector<8x32xf32>
    %cst_9 = arith.constant 9.99999974E-6 : f32
    %17 = vector.broadcast %cst_9 : f32 to vector<8x1xf32>
    %18 = arith.addf %14, %17 : vector<8x1xf32>
    %19 = math.rsqrt %18 : vector<8x1xf32>
    %20 = vector.broadcast %19 : vector<8x1xf32> to vector<8x32xf32>
    %21 = arith.mulf %16, %20 : vector<8x32xf32>
    %22 = vector.broadcast %0 : vector<1x32xf32> to vector<8x32xf32>
    %23 = arith.mulf %21, %22 : vector<8x32xf32>
    %24 = vector.broadcast %1 : vector<1x32xf32> to vector<8x32xf32>
    %25 = arith.addf %23, %24 : vector<8x32xf32>
    %26 = arith.truncf %25 : vector<8x32xf32> to vector<8x32xbf16>
    %c0_10 = arith.constant 0 : index
    %c0_11 = arith.constant 0 : index
    %c0_12 = arith.constant 0 : index
    %27 = vector.load %arg3[%c0_10, %c0_11, %c0_12] : memref<1x8x32xf32, #tpu.memory_space<vmem>>, vector<1x8x32xf32>
    %28 = vector.shape_cast %27 : vector<1x8x32xf32> to vector<8x32xf32>
    %cst_13 = arith.constant dense<0.000000e+00> : vector<8xf32>
    %29 = vector.multi_reduction <add>, %28, %cst_13 [1] : vector<8x32xf32> to vector<8xf32>
    %30 = vector.shape_cast %29 : vector<8xf32> to vector<8x1xf32>
    %cst_14 = arith.constant 3.200000e+01 : f32
    %31 = vector.broadcast %cst_14 : f32 to vector<8x1xf32>
    %32 = arith.divf %30, %31 : vector<8x1xf32>
    %33 = vector.broadcast %32 : vector<8x1xf32> to vector<8x32xf32>
    %34 = arith.subf %28, %33 : vector<8x32xf32>
    %35 = arith.mulf %34, %34 : vector<8x32xf32>
    %cst_15 = arith.constant dense<0.000000e+00> : vector<8xf32>
    %36 = vector.multi_reduction <add>, %35, %cst_15 [1] : vector<8x32xf32> to vector<8xf32>
    %37 = vector.shape_cast %36 : vector<8xf32> to vector<8x1xf32>
    %cst_16 = arith.constant 3.200000e+01 : f32
    %38 = vector.broadcast %cst_16 : f32 to vector<8x1xf32>
    %39 = arith.divf %37, %38 : vector<8x1xf32>
    %40 = vector.broadcast %32 : vector<8x1xf32> to vector<8x32xf32>
    %41 = arith.subf %28, %40 : vector<8x32xf32>
    %cst_17 = arith.constant 9.99999974E-6 : f32
    %42 = vector.broadcast %cst_17 : f32 to vector<8x1xf32>
    %43 = arith.addf %39, %42 : vector<8x1xf32>
    %44 = math.rsqrt %43 : vector<8x1xf32>
    %45 = vector.broadcast %44 : vector<8x1xf32> to vector<8x32xf32>
    %46 = arith.mulf %41, %45 : vector<8x32xf32>
    %47 = vector.broadcast %0 : vector<1x32xf32> to vector<8x32xf32>
    %48 = arith.mulf %46, %47 : vector<8x32xf32>
    %49 = vector.broadcast %1 : vector<1x32xf32> to vector<8x32xf32>
    %50 = arith.addf %48, %49 : vector<8x32xf32>
    %51 = arith.truncf %50 : vector<8x32xf32> to vector<8x32xbf16>
    %c0_18 = arith.constant 0 : index
    %c0_19 = arith.constant 0 : index
    %52 = vector.load %arg6[%c0_18, %c0_19] : memref<32x32xbf16, #tpu.memory_space<vmem>>, vector<32x32xbf16>
    %cst_20 = arith.constant dense<0.000000e+00> : vector<8x32xf32>
    %53 = tpu.matmul %26, %52, %cst_20 {dimension_numbers = #tpu.dot_dimension_numbers<[1], [0], [0], [1], [0, 0, 1, 1], [], []>} : vector<8x32xbf16>, vector<32x32xbf16>, vector<8x32xf32> -> vector<8x32xf32>
    %c0_21 = arith.constant 0 : index
    %c0_22 = arith.constant 0 : index
    %54 = vector.load %arg7[%c0_21, %c0_22] : memref<1x32xf32, #tpu.memory_space<vmem>>, vector<1x32xf32>
    %55 = vector.broadcast %54 : vector<1x32xf32> to vector<8x32xf32>
    %56 = arith.addf %53, %55 : vector<8x32xf32>
    %c0_23 = arith.constant 0 : index
    %c0_24 = arith.constant 0 : index
    %57 = vector.load %arg8[%c0_23, %c0_24] : memref<32x64xbf16, #tpu.memory_space<vmem>>, vector<32x64xbf16>
    %cst_25 = arith.constant dense<0.000000e+00> : vector<8x64xf32>
    %58 = tpu.matmul %51, %57, %cst_25 {dimension_numbers = #tpu.dot_dimension_numbers<[1], [0], [0], [1], [0, 0, 1, 1], [], []>} : vector<8x32xbf16>, vector<32x64xbf16>, vector<8x64xf32> -> vector<8x64xf32>
    %c0_26 = arith.constant 0 : index
    %c0_27 = arith.constant 0 : index
    %59 = vector.load %arg9[%c0_26, %c0_27] : memref<1x64xf32, #tpu.memory_space<vmem>>, vector<1x64xf32>
    %60 = vector.broadcast %59 : vector<1x64xf32> to vector<8x64xf32>
    %61 = arith.addf %58, %60 : vector<8x64xf32>
    %62 = vector.extract_strided_slice %61 {offsets = [0, 0], sizes = [8, 32], strides = [1, 1]} : vector<8x64xf32> to vector<8x32xf32>
    %63 = vector.extract_strided_slice %61 {offsets = [0, 32], sizes = [8, 32], strides = [1, 1]} : vector<8x64xf32> to vector<8x32xf32>
    %64 = arith.truncf %63 : vector<8x32xf32> to vector<8x32xbf16>
    %65 = vector.extract_strided_slice %56 {offsets = [0, 0], sizes = [8, 8], strides = [1, 1]} : vector<8x32xf32> to vector<8x8xf32>
    %66 = arith.truncf %65 : vector<8x8xf32> to vector<8x8xbf16>
    %67 = vector.extract_strided_slice %62 {offsets = [0, 0], sizes = [8, 8], strides = [1, 1]} : vector<8x32xf32> to vector<8x8xf32>
    %68 = arith.truncf %67 : vector<8x8xf32> to vector<8x8xbf16>
    %69 = vector.extract_strided_slice %64 {offsets = [0, 0], sizes = [8, 8], strides = [1, 1]} : vector<8x32xbf16> to vector<8x8xbf16>
    %cst_28 = arith.constant dense<0.000000e+00> : vector<8x8xf32>
    %70 = tpu.matmul %66, %68, %cst_28 {dimension_numbers = #tpu.dot_dimension_numbers<[1], [1], [0], [0], [0, 0, 1, 0], [], []>} : vector<8x8xbf16>, vector<8x8xbf16>, vector<8x8xf32> -> vector<8x8xf32>
    %cst_29 = arith.constant dense<0xFF800000> : vector<8xf32>
    %71 = vector.multi_reduction <maximumf>, %70, %cst_29 [1] : vector<8x8xf32> to vector<8xf32>
    %72 = vector.shape_cast %71 : vector<8xf32> to vector<8x1xf32>
    %73 = vector.broadcast %72 : vector<8x1xf32> to vector<8x8xf32>
    %74 = arith.subf %70, %73 : vector<8x8xf32>
    %75 = math.exp %74 : vector<8x8xf32>
    %cst_30 = arith.constant dense<0.000000e+00> : vector<8xf32>
    %76 = vector.multi_reduction <add>, %75, %cst_30 [1] : vector<8x8xf32> to vector<8xf32>
    %77 = vector.shape_cast %76 : vector<8xf32> to vector<8x1xf32>
    %78 = arith.truncf %75 : vector<8x8xf32> to vector<8x8xbf16>
    %cst_31 = arith.constant dense<0.000000e+00> : vector<8x8xf32>
    %79 = tpu.matmul %78, %69, %cst_31 {dimension_numbers = #tpu.dot_dimension_numbers<[1], [0], [0], [1], [0, 0, 1, 1], [], []>} : vector<8x8xbf16>, vector<8x8xbf16>, vector<8x8xf32> -> vector<8x8xf32>
    %80 = tpu.reciprocal %77 {approx = true} : vector<8x1xf32> -> vector<8x1xf32>
    %81 = vector.broadcast %80 : vector<8x1xf32> to vector<8x8xf32>
    %82 = arith.mulf %79, %81 : vector<8x8xf32>
    %83 = vector.extract_strided_slice %56 {offsets = [0, 8], sizes = [8, 8], strides = [1, 1]} : vector<8x32xf32> to vector<8x8xf32>
    %84 = arith.truncf %83 : vector<8x8xf32> to vector<8x8xbf16>
    %85 = vector.extract_strided_slice %62 {offsets = [0, 8], sizes = [8, 8], strides = [1, 1]} : vector<8x32xf32> to vector<8x8xf32>
    %86 = arith.truncf %85 : vector<8x8xf32> to vector<8x8xbf16>
    %87 = vector.extract_strided_slice %64 {offsets = [0, 8], sizes = [8, 8], strides = [1, 1]} : vector<8x32xbf16> to vector<8x8xbf16>
    %cst_32 = arith.constant dense<0.000000e+00> : vector<8x8xf32>
    %88 = tpu.matmul %84, %86, %cst_32 {dimension_numbers = #tpu.dot_dimension_numbers<[1], [1], [0], [0], [0, 0, 1, 0], [], []>} : vector<8x8xbf16>, vector<8x8xbf16>, vector<8x8xf32> -> vector<8x8xf32>
    %cst_33 = arith.constant dense<0xFF800000> : vector<8xf32>
    %89 = vector.multi_reduction <maximumf>, %88, %cst_33 [1] : vector<8x8xf32> to vector<8xf32>
    %90 = vector.shape_cast %89 : vector<8xf32> to vector<8x1xf32>
    %91 = vector.broadcast %90 : vector<8x1xf32> to vector<8x8xf32>
    %92 = arith.subf %88, %91 : vector<8x8xf32>
    %93 = math.exp %92 : vector<8x8xf32>
    %cst_34 = arith.constant dense<0.000000e+00> : vector<8xf32>
    %94 = vector.multi_reduction <add>, %93, %cst_34 [1] : vector<8x8xf32> to vector<8xf32>
    %95 = vector.shape_cast %94 : vector<8xf32> to vector<8x1xf32>
    %96 = arith.truncf %93 : vector<8x8xf32> to vector<8x8xbf16>
    %cst_35 = arith.constant dense<0.000000e+00> : vector<8x8xf32>
    %97 = tpu.matmul %96, %87, %cst_35 {dimension_numbers = #tpu.dot_dimension_numbers<[1], [0], [0], [1], [0, 0, 1, 1], [], []>} : vector<8x8xbf16>, vector<8x8xbf16>, vector<8x8xf32> -> vector<8x8xf32>
    %98 = tpu.reciprocal %95 {approx = true} : vector<8x1xf32> -> vector<8x1xf32>
    %99 = vector.broadcast %98 : vector<8x1xf32> to vector<8x8xf32>
    %100 = arith.mulf %97, %99 : vector<8x8xf32>
    %101 = vector.extract_strided_slice %56 {offsets = [0, 16], sizes = [8, 8], strides = [1, 1]} : vector<8x32xf32> to vector<8x8xf32>
    %102 = arith.truncf %101 : vector<8x8xf32> to vector<8x8xbf16>
    %103 = vector.extract_strided_slice %62 {offsets = [0, 16], sizes = [8, 8], strides = [1, 1]} : vector<8x32xf32> to vector<8x8xf32>
    %104 = arith.truncf %103 : vector<8x8xf32> to vector<8x8xbf16>
    %105 = vector.extract_strided_slice %64 {offsets = [0, 16], sizes = [8, 8], strides = [1, 1]} : vector<8x32xbf16> to vector<8x8xbf16>
    %cst_36 = arith.constant dense<0.000000e+00> : vector<8x8xf32>
    %106 = tpu.matmul %102, %104, %cst_36 {dimension_numbers = #tpu.dot_dimension_numbers<[1], [1], [0], [0], [0, 0, 1, 0], [], []>} : vector<8x8xbf16>, vector<8x8xbf16>, vector<8x8xf32> -> vector<8x8xf32>
    %cst_37 = arith.constant dense<0xFF800000> : vector<8xf32>
    %107 = vector.multi_reduction <maximumf>, %106, %cst_37 [1] : vector<8x8xf32> to vector<8xf32>
    %108 = vector.shape_cast %107 : vector<8xf32> to vector<8x1xf32>
    %109 = vector.broadcast %108 : vector<8x1xf32> to vector<8x8xf32>
    %110 = arith.subf %106, %109 : vector<8x8xf32>
    %111 = math.exp %110 : vector<8x8xf32>
    %cst_38 = arith.constant dense<0.000000e+00> : vector<8xf32>
    %112 = vector.multi_reduction <add>, %111, %cst_38 [1] : vector<8x8xf32> to vector<8xf32>
    %113 = vector.shape_cast %112 : vector<8xf32> to vector<8x1xf32>
    %114 = arith.truncf %111 : vector<8x8xf32> to vector<8x8xbf16>
    %cst_39 = arith.constant dense<0.000000e+00> : vector<8x8xf32>
    %115 = tpu.matmul %114, %105, %cst_39 {dimension_numbers = #tpu.dot_dimension_numbers<[1], [0], [0], [1], [0, 0, 1, 1], [], []>} : vector<8x8xbf16>, vector<8x8xbf16>, vector<8x8xf32> -> vector<8x8xf32>
    %116 = tpu.reciprocal %113 {approx = true} : vector<8x1xf32> -> vector<8x1xf32>
    %117 = vector.broadcast %116 : vector<8x1xf32> to vector<8x8xf32>
    %118 = arith.mulf %115, %117 : vector<8x8xf32>
    %119 = vector.extract_strided_slice %56 {offsets = [0, 24], sizes = [8, 8], strides = [1, 1]} : vector<8x32xf32> to vector<8x8xf32>
    %120 = arith.truncf %119 : vector<8x8xf32> to vector<8x8xbf16>
    %121 = vector.extract_strided_slice %62 {offsets = [0, 24], sizes = [8, 8], strides = [1, 1]} : vector<8x32xf32> to vector<8x8xf32>
    %122 = arith.truncf %121 : vector<8x8xf32> to vector<8x8xbf16>
    %123 = vector.extract_strided_slice %64 {offsets = [0, 24], sizes = [8, 8], strides = [1, 1]} : vector<8x32xbf16> to vector<8x8xbf16>
    %cst_40 = arith.constant dense<0.000000e+00> : vector<8x8xf32>
    %124 = tpu.matmul %120, %122, %cst_40 {dimension_numbers = #tpu.dot_dimension_numbers<[1], [1], [0], [0], [0, 0, 1, 0], [], []>} : vector<8x8xbf16>, vector<8x8xbf16>, vector<8x8xf32> -> vector<8x8xf32>
    %cst_41 = arith.constant dense<0xFF800000> : vector<8xf32>
    %125 = vector.multi_reduction <maximumf>, %124, %cst_41 [1] : vector<8x8xf32> to vector<8xf32>
    %126 = vector.shape_cast %125 : vector<8xf32> to vector<8x1xf32>
    %127 = vector.broadcast %126 : vector<8x1xf32> to vector<8x8xf32>
    %128 = arith.subf %124, %127 : vector<8x8xf32>
    %129 = math.exp %128 : vector<8x8xf32>
    %cst_42 = arith.constant dense<0.000000e+00> : vector<8xf32>
    %130 = vector.multi_reduction <add>, %129, %cst_42 [1] : vector<8x8xf32> to vector<8xf32>
    %131 = vector.shape_cast %130 : vector<8xf32> to vector<8x1xf32>
    %132 = arith.truncf %129 : vector<8x8xf32> to vector<8x8xbf16>
    %cst_43 = arith.constant dense<0.000000e+00> : vector<8x8xf32>
    %133 = tpu.matmul %132, %123, %cst_43 {dimension_numbers = #tpu.dot_dimension_numbers<[1], [0], [0], [1], [0, 0, 1, 1], [], []>} : vector<8x8xbf16>, vector<8x8xbf16>, vector<8x8xf32> -> vector<8x8xf32>
    %134 = tpu.reciprocal %131 {approx = true} : vector<8x1xf32> -> vector<8x1xf32>
    %135 = vector.broadcast %134 : vector<8x1xf32> to vector<8x8xf32>
    %136 = arith.mulf %133, %135 : vector<8x8xf32>
    %137 = tpu.concatenate %82, %100, %118, %136 in 1 : vector<8x8xf32>, vector<8x8xf32>, vector<8x8xf32>, vector<8x8xf32> -> vector<8x32xf32>
    %138 = arith.truncf %137 : vector<8x32xf32> to vector<8x32xbf16>
    %c0_44 = arith.constant 0 : index
    %c0_45 = arith.constant 0 : index
    %139 = vector.load %arg10[%c0_44, %c0_45] : memref<32x32xbf16, #tpu.memory_space<vmem>>, vector<32x32xbf16>
    %cst_46 = arith.constant dense<0.000000e+00> : vector<8x32xf32>
    %140 = tpu.matmul %138, %139, %cst_46 {dimension_numbers = #tpu.dot_dimension_numbers<[1], [0], [0], [1], [0, 0, 1, 1], [], []>} : vector<8x32xbf16>, vector<32x32xbf16>, vector<8x32xf32> -> vector<8x32xf32>
    %c0_47 = arith.constant 0 : index
    %c0_48 = arith.constant 0 : index
    %141 = vector.load %arg11[%c0_47, %c0_48] : memref<1x32xf32, #tpu.memory_space<vmem>>, vector<1x32xf32>
    %142 = vector.broadcast %141 : vector<1x32xf32> to vector<8x32xf32>
    %143 = arith.addf %140, %142 : vector<8x32xf32>
    %c0_49 = arith.constant 0 : index
    %c0_50 = arith.constant 0 : index
    %c0_51 = arith.constant 0 : index
    %144 = vector.load %arg12[%c0_49, %c0_50, %c0_51] : memref<1x8x32xf32, #tpu.memory_space<vmem>>, vector<1x8x32xf32>
    %145 = vector.shape_cast %144 : vector<1x8x32xf32> to vector<8x32xf32>
    %146 = vector.shape_cast %143 : vector<8x32xf32> to vector<1x8x32xf32>
    tpu.vector_store %arg12[%c0_49, %c0_50, %c0_51], %146 {strides = array<i32>} : memref<1x8x32xf32, #tpu.memory_space<vmem>>, vector<1x8x32xf32>,
    return
  }
  func.func @transform_0(%arg0: i32, %arg1: i32) -> (i32, i32, i32) {
    %c0_i32 = arith.constant 0 : i32
    %c0_i32_0 = arith.constant 0 : i32
    return %arg0, %arg1, %c0_i32 : i32, i32, i32
  }
  func.func @transform_1(%arg0: i32, %arg1: i32) -> (i32, i32, i32) {
    %c0_i32 = arith.constant 0 : i32
    %c0_i32_0 = arith.constant 0 : i32
    %c0_i32_1 = arith.constant 0 : i32
    return %arg0, %c0_i32, %c0_i32_0 : i32, i32, i32
  }
  func.func @transform_2(%arg0: i32, %arg1: i32) -> (i32, i32) {
    %c0_i32 = arith.constant 0 : i32
    %c0_i32_0 = arith.constant 0 : i32
    %c0_i32_1 = arith.constant 0 : i32
    return %c0_i32, %c0_i32_0 : i32, i32
  }
  func.func @transform_3(%arg0: i32, %arg1: i32) -> (i32, i32) {
    %c0_i32 = arith.constant 0 : i32
    %c0_i32_0 = arith.constant 0 : i32
    %c0_i32_1 = arith.constant 0 : i32
    return %c0_i32, %c0_i32_0 : i32, i32
  }
  func.func @transform_4(%arg0: i32, %arg1: i32) -> (i32, i32) {
    %c0_i32 = arith.constant 0 : i32
    %c0_i32_0 = arith.constant 0 : i32
    %c0_i32_1 = arith.constant 0 : i32
    return %c0_i32, %c0_i32_0 : i32, i32
  }
  func.func @transform_5(%arg0: i32, %arg1: i32) -> (i32, i32) {
    %c0_i32 = arith.constant 0 : i32
    %c0_i32_0 = arith.constant 0 : i32
    %c0_i32_1 = arith.constant 0 : i32
    return %c0_i32, %c0_i32_0 : i32, i32
  }
  func.func @transform_6(%arg0: i32, %arg1: i32) -> (i32, i32) {
    %c0_i32 = arith.constant 0 : i32
    %c0_i32_0 = arith.constant 0 : i32
    %c0_i32_1 = arith.constant 0 : i32
    return %c0_i32, %c0_i32_0 : i32, i32
  }
  func.func @transform_7(%arg0: i32, %arg1: i32) -> (i32, i32) {
    %c0_i32 = arith.constant 0 : i32
    %c0_i32_0 = arith.constant 0 : i32
    %c0_i32_1 = arith.constant 0 : i32
    return %c0_i32, %c0_i32_0 : i32, i32
  }
  func.func @transform_8(%arg0: i32, %arg1: i32) -> (i32, i32) {
    %c0_i32 = arith.constant 0 : i32
    %c0_i32_0 = arith.constant 0 : i32
    %c0_i32_1 = arith.constant 0 : i32
    return %c0_i32, %c0_i32_0 : i32, i32
  }
  func.func @transform_9(%arg0: i32, %arg1: i32) -> (i32, i32) {
    %c0_i32 = arith.constant 0 : i32
    %c0_i32_0 = arith.constant 0 : i32
    %c0_i32_1 = arith.constant 0 : i32
    return %c0_i32, %c0_i32_0 : i32, i32
  }
  func.func @transform_10(%arg0: i32, %arg1: i32) -> (i32, i32, i32) {
    %c0_i32 = arith.constant 0 : i32
    %c0_i32_0 = arith.constant 0 : i32
    return %arg0, %arg1, %c0_i32 : i32, i32, i32
  }
}

</mosaic_0001>

<bundles_post_ra>
// kernel: tpu_custom_call.1
= control target key start
LH: loop header
LB: loop body
LE: loop exit
PB: predicated region body
PF: predicated region fallthrough
CT: control target
= control target key end

     0   :  { %s2247_s0 = inlined_call_operand.hbm [shape: f32[2,8,32], index: 0, kind: input, shape index: {}]   ;;  %s2248_s1 = inlined_call_operand.hbm [shape: f32[2,8,32], index: 1, kind: input, shape index: {}]   ;;  %s2249_s2 = inlined_call_operand.vmem [shape: f32[1,32], index: 2, kind: input, shape index: {}]   ;;  %s2250_s3 = inlined_call_operand.vmem [shape: f32[1,32], index: 3, kind: input, shape index: {}]   ;;  %s2251_s4 = inlined_call_operand.hbm [shape: bf16[32,32], index: 4, kind: input, shape index: {}]   ;;  %s2252_s5 = inlined_call_operand.vmem [shape: f32[1,32], index: 5, kind: input, shape index: {}]   ;;  %s2253_s6 = inlined_call_operand.vmem [shape: bf16[32,64], index: 6, kind: input, shape index: {}]   ;;  %s2254_s7 = inlined_call_operand.vmem [shape: f32[1,64], index: 7, kind: input, shape index: {}]   ;;  %s2255_s8 = inlined_call_operand.hbm [shape: bf16[32,32], index: 8, kind: input, shape index: {}]   ;;  %s2256_s9 = inlined_call_operand.vmem [shape: f32[1,32], index: 9, kind: input, shape index: {}]   ;;  %s2257_s10 = inlined_call_operand.hbm [shape: f32[2,8,32], index: 10, kind: output, shape index: {}]  }
   0x1   :  { %2267 = sst [smem:[#allocation21_spill]] %s2251_s4 }
   0x2   :  { %2268 = sst [smem:[#allocation22_spill]] %s2255_s8 }
   0x3   :  { %2269 = sst [smem:[#allocation23_spill]] %s2256_s9 }
   0x4   :  { %2270 = sst [smem:[#allocation24_spill]] %s2257_s10 }
   0x5   :  { %15 = vsyncpa [#allocation3], 0 }
   0x6   :  { %17 = vsyncpa [#allocation3 + $0x1], 0 }
   0x7   :  { %18 = vsyncpa [#allocation6], 0 }
   0x8   :  { %20 = vsyncpa [#allocation6 + $0x1], 0 }
   0x9   :  { %21 = vsyncpa [#allocation9], 0 }
   0xa   :  { %22 = vsyncpa [#allocation4], 0 }
   0xb   :  { %24 = vsyncpa [#allocation4 + $0x1], 0  ;;  %s1858_s13 = smov 0   ;;  %s1860_s14 = smov 0  }
   0xc   :  { %s1862_s15 = smov 0   ;;  %s1864_s16 = smov 0  }
   0xd   :  { %s1866_s17 = smov 0   ;;  %s1868_s18 = smov 0  }
   0xe LB: > { %2271 = sst [smem:[#allocation16_spill]] %s1762_s13  ;;  %s1889_s19 = sadd.s32 4294967295, %s1782_s18   ;;  %s1782_s18 = sphi %s1868_s18, %s30_s18   ;;  %s1778_s17 = sphi %s1866_s17, %s2300_s17   ;;  %s1774_s16 = sphi %s1864_s16, %s2299_s16   ;;  %s1770_s15 = sphi %s1862_s15, %s2303_s15   ;;  %s1766_s14 = sphi %s1860_s14, %s2302_s14   ;;  %s1762_s13 = sphi %s1858_s13, %s2301_s13  }
   0xf   : > { %2272 = sst [smem:[#allocation17_spill]] %s1778_s17  ;;  %s1306_s20 = sadd.s32 4294967294, %s1782_s18  }
  0x10   : > { %p64_p0 = scmp.ne.s32.totalorder %s1766_s14, %s1762_s13  ;;  %p2259_p1 = scmp.eq.s32.totalorder %s1889_s19, 0 }
  0x11   : > { %p290_p3 = scmp.eq.s32.totalorder %s1306_s20, 1  ;;  %p1307_p5 = scmp.ge.s32.totalorder %s1782_s18, 1 }
  0x12   : > { %p1898_p4 = por %p2259_p1, %p64_p0  ;;  %p297_p7 = scmp.lt.s32.totalorder %s1782_s18, 3 }
  0x13   : > { %p1903_p6 = por %p290_p3, %p64_p0  ;;  %s1784_s24 = smov [#allocation7]  }
  0x14   : > { %s2273_s21 = scalar_select %p1898_p4, 1, 0 }
  0x15   : > { %s2274_s22 = scalar_select %p1903_p6, 1, 0 }
  0x16   : > { %p1908_p8 = pnand %p1307_p5, %p297_p7  ;;  %s315_s25 = sshll.u32 %s1784_s24, 4  ;;  %s1912_s25 = int_to_ptr.vmem [resolvable:$true] %s315_s25 }
  0x17   : > { %2275 = sst [smem:[#allocation18_spill]] %s2274_s22  ;;  %s1785_s27 = smov [#allocation8]  }
  0x18   : > { %s2276_s23 = scalar_select %p1908_p8, 1, 0 }
  0x19   : > { %p1458_p9 = pneg %p1908_p8  ;;  %s337_s28 = sshll.u32 %s1785_s27, 4  ;;  %s1923_s28 = int_to_ptr.vmem [resolvable:$true] %s337_s28 }
  0x1a   : > { %s2278_s4 = sld [smem:[#allocation21_spill]] }
  0x1b   : > { %p1919_p11 = pnand %p1458_p9, %p2259_p1 }
  0x1d   : > { %p1574_p13 = pneg %p1919_p11 }
  0x20   : > { %s1572_s11 = scalar_lea.hbm %s2278_s4, 256 }
  0x21   : > { %p1573_p12 = scmp.ne.s32.totalorder %s2278_s4, %s1572_s11  ;;  %p1579_p5 = scmp.lt.u32.totalorder %s1572_s11, %s2278_s4 }
  0x23   : > { %p1575_p0 = pnand %p1574_p13, %p1573_p12 }
  0x25   : > { %p1576_p3 = pneg %p1575_p0 }
  0x27   : > { %p1581_p7 = pnand %p1579_p5, %p1576_p3 }
  0x29   : > { %1584 = shalt.err (!%p1581_p7)
}
  0x2a   : > { %s1585_s27 = scalar_lea.vmem %s1912_s25, 256  ;;  %p1593_p2 = scmp.lt.s32.totalorder %s1912_s25, %s1912_s25 }
  0x2b   : > { %p1586_p9 = scmp.ne.s32.totalorder %s1912_s25, %s1585_s27  ;;  %p1594_p12 = scmp.lt.s32.totalorder %s1585_s27, %s1585_s27 }
  0x2d   : > { %p1588_p10 = pnand %p1586_p9, %p1574_p13  ;;  %p1595_p0 = por %p1594_p12, %p1593_p2 }
  0x2f   : > { %p1589_p1 = pneg %p1588_p10 }
  0x31   : > { %p1596_p6 = pnand %p1595_p0, %p1589_p1 }
  0x33   : > { %1599 = shalt.err (!%p1596_p6)
}
  0x34   : > { %s1786_s22 = smov 64   ;;  %s1787_s29 = smov 4  }
  0x35   : > { %1461 = dma.hbm_to_vmem [thread:$0]  (!%p1919_p11), %s2278_s4, 256, %s1912_s25, [#allocation6], %s1786_s22, %s1786_s22, %s1787_s29  }
  0x36   : > { %s2279_s8 = sld [smem:[#allocation22_spill]] }
  0x3c   : > { %s1600_s24 = scalar_lea.hbm %s2279_s8, 256 }
  0x3d   : > { %p1601_p2 = scmp.ne.s32.totalorder %s2279_s8, %s1600_s24  ;;  %p1607_p10 = scmp.lt.u32.totalorder %s1600_s24, %s2279_s8 }
  0x3f   : > { %p1603_p1 = pnand %p1601_p2, %p1574_p13 }
  0x41   : > { %p1604_p6 = pneg %p1603_p1 }
  0x43   : > { %p1609_p3 = pnand %p1607_p10, %p1604_p6 }
  0x45   : > { %1612 = shalt.err (!%p1609_p3)
}
  0x46   : > { %s1613_s25 = scalar_lea.vmem %s1923_s28, 256  ;;  %p1621_p12 = scmp.lt.s32.totalorder %s1923_s28, %s1923_s28 }
  0x47   : > { %p1614_p5 = scmp.ne.s32.totalorder %s1923_s28, %s1613_s25  ;;  %p1622_p0 = scmp.lt.s32.totalorder %s1613_s25, %s1613_s25 }
  0x49   : > { %p1616_p7 = pnand %p1614_p5, %p1574_p13  ;;  %p1623_p2 = por %p1622_p0, %p1621_p12 }
  0x4b   : > { %p1617_p9 = pneg %p1616_p7 }
  0x4d   : > { %p1624_p1 = pnand %p1623_p2, %p1617_p9 }
  0x4f   : > { %1627 = shalt.err (!%p1624_p1)
}
  0x50   : > { %1464 = dma.hbm_to_vmem [thread:$0]  (!%p1919_p11), %s2279_s8, 256, %s1923_s28, [#allocation9], %s1786_s22, %s1786_s22, %s1787_s29  }
  0x51   : > { %s42_s13 = sadd.s32 1, %s1778_s17  ;;  %s51_s30 = sadd.s32 1, %s1770_s15 }
  0x52   : > { %p44_p13 = scmp.ge.s32.totalorder %s42_s13, 2  ;;  %p58_p6 = scmp.ne.s32.totalorder %s1770_s15, %s1766_s14 }
  0x53   : > { %p59_p10 = scmp.eq.s32.totalorder %s1782_s18, 0  ;;  %p1478_p3 = scmp.lt.s32.totalorder %s1782_s18, 2 }
  0x54   : > { %s2305_s13 = smov (%p44_p13, %s42_s13), 0  ;;  %p2281_p7 = scmp.eq.s32.totalorder %s1889_s19, 1 }
  0x55   : > { %2280 = sst [smem:[#allocation19_spill]] %s2305_s13  ;;  %p60_p5 = por %p59_p10, %p58_p6 }
  0x56   : > { %p1987_p9 = por %p2281_p7, %p58_p6  ;;  %s46_s11 = ssub.s32 %s1778_s17, %s2305_s13 }
  0x57   : > { %s354_s12 = sand.u32 1, %s1770_s15   ;;  %p49_p12 = scmp.eq.s32.totalorder %s46_s11, 0 }
  0x58   : > { %s2282_s26 = scalar_select %p1987_p9, 1, 0 }
  0x59   : > { %s1994_s28 = sshll.u32 %s354_s12, 3  ;;  %s1312_s22 = sshll.u32 %s1778_s17, 7 }
  0x5a   : > { %s1998_s29 = scalar_select %p49_p12, %s1770_s15, %s51_s30  }
  0x5b   : > { %s2003_s27 = scalar_lea.hbm %s2247_s0, %s1312_s22  ;;  %s358_s25 = scalar_lea.vmem [#allocation2], %s1994_s28 }
  0x5c   : > { %2283 = sst [smem:[#allocation20_spill]] %s1998_s29  ;;  %s366_s9 = sshll.u32 %s358_s25, 4  ;;  %s2012_s9 = int_to_ptr.vmem [resolvable:$true] %s366_s9 }
  0x5d   : > { %p2008_p11 = pnand %p1478_p3, %p60_p5  ;;  %s2017_s20 = scalar_lea.hbm %s2248_s1, %s1312_s22 }
  0x5e   : > { %s355_s24 = scalar_lea.sflag [#allocation3], %s354_s12  ;;  %s1628_s4 = scalar_lea.hbm %s2003_s27, 128 }
  0x5f   : > { %p1629_p0 = scmp.ne.s32.totalorder %s2003_s27, %s1628_s4  ;;  %p1630_p2 = pneg %p2008_p11 }
  0x60   : > { %s1633_s13 = scalar_lea.hbm %s2247_s0, 256  ;;  %p1634_p6 = scmp.lt.u32.totalorder %s2003_s27, %s2247_s0 }
  0x61   : > { %p1631_p1 = pnand %p1630_p2, %p1629_p0  ;;  %p1635_p10 = scmp.lt.u32.totalorder %s1633_s13, %s1628_s4 }
  0x62   : > { %p1637_p5 = scmp.lt.u32.totalorder %s1628_s4, %s2003_s27 }
  0x63   : > { %p1632_p13 = pneg %p1631_p1  ;;  %p1636_p3 = por %p1635_p10, %p1634_p6 }
  0x65   : > { %p1638_p7 = por %p1637_p5, %p1636_p3 }
  0x67   : > { %p1639_p12 = pnand %p1638_p7, %p1632_p13 }
  0x69   : > { %1642 = shalt.err (!%p1639_p12)
}
  0x6a   : > { %s1643_s12 = scalar_lea.vmem %s2012_s9, 128  ;;  %s1788_s8 = smov [#allocation2]  }
  0x6b   : > { %p1644_p0 = scmp.ne.s32.totalorder %s2012_s9, %s1643_s12  ;;  %s1648_s22 = sshll.u32 %s1788_s8, 4  ;;  %s1649_s22 = int_to_ptr.vmem [resolvable:$false] %s1648_s22 }
  0x6c   : > { %s1650_s17 = scalar_lea.vmem %s1649_s22, 256  ;;  %p1651_p4 = scmp.lt.s32.totalorder %s2012_s9, %s1649_s22 }
  0x6d   : > { %p1646_p1 = pnand %p1644_p0, %p1630_p2  ;;  %p1652_p6 = scmp.lt.s32.totalorder %s1650_s17, %s1643_s12 }
  0x6f   : > { %p1647_p9 = pneg %p1646_p1  ;;  %p1653_p10 = por %p1652_p6, %p1651_p4 }
  0x71   : > { %p1654_p3 = pnand %p1653_p10, %p1647_p9 }
  0x73   : > { %1657 = shalt.err (!%p1654_p3)
}
  0x74   : > { %1468 = dma.hbm_to_vmem [thread:$0]  (!%p2008_p11), %s2003_s27, 128, %s2012_s9, %s355_s24  }
  0x75   : > { %s373_s4 = sand.u32 1, %s1782_s18   ;;  %s377_s13 = scalar_lea.vmem [#allocation5], %s1994_s28 }
  0x76   : > { %s384_s29 = sshll.u32 %s377_s13, 4  ;;  %s374_s30 = scalar_lea.sflag [#allocation6], %s373_s4  ;;  %s385_s29 = int_to_ptr.vmem [resolvable:$true] %s384_s29 }
  0x77   : > { %s1658_s11 = scalar_lea.hbm %s2017_s20, 128  ;;  %s1663_s8 = scalar_lea.hbm %s2248_s1, 256 }
  0x78   : > { %p1659_p4 = scmp.ne.s32.totalorder %s2017_s20, %s1658_s11  ;;  %p1664_p5 = scmp.lt.u32.totalorder %s2017_s20, %s2248_s1 }
  0x79   : > { %p1665_p7 = scmp.lt.u32.totalorder %s1663_s8, %s1658_s11  ;;  %p1667_p0 = scmp.lt.u32.totalorder %s1658_s11, %s2017_s20 }
  0x7a   : > { %p1661_p9 = pnand %p1659_p4, %p1630_p2 }
  0x7b   : > { %p1666_p12 = por %p1665_p7, %p1664_p5 }
  0x7c   : > { %p1662_p13 = pneg %p1661_p9 }
  0x7d   : > { %p1668_p1 = por %p1667_p0, %p1666_p12 }
  0x7f   : > { %p1669_p6 = pnand %p1668_p1, %p1662_p13 }
  0x81   : > { %1672 = shalt.err (!%p1669_p6)
}
  0x82   : > { %s1673_s28 = scalar_lea.vmem %s385_s29, 128  ;;  %s1789_s27 = smov [#allocation5]  }
  0x83   : > { %p1674_p10 = scmp.ne.s32.totalorder %s385_s29, %s1673_s28  ;;  %s1678_s9 = sshll.u32 %s1789_s27, 4  ;;  %s1679_s9 = int_to_ptr.vmem [resolvable:$false] %s1678_s9 }
  0x84   : > { %s1680_s24 = scalar_lea.vmem %s1679_s9, 256  ;;  %p1681_p9 = scmp.lt.s32.totalorder %s385_s29, %s1679_s9 }
  0x85   : > { %p1676_p3 = pnand %p1674_p10, %p1630_p2  ;;  %p1682_p8 = scmp.lt.s32.totalorder %s1680_s24, %s1673_s28 }
  0x87   : > { %p1677_p4 = pneg %p1676_p3  ;;  %p1683_p5 = por %p1682_p8, %p1681_p9 }
  0x89   : > { %p1684_p7 = pnand %p1683_p5, %p1677_p4 }
  0x8b   : > { %1687 = shalt.err (!%p1684_p7)
}
  0x8c   : > { %1471 = dma.hbm_to_vmem [thread:$0]  (!%p2008_p11), %s2017_s20, 128, %s385_s29, %s374_s30  }
  0x8d   : > { %p2285_p13 = scmp.ne.s32.totalorder %s2276_s23, 0 }
  0x8e   : > { %s2068_s4 = sand.u32 (!%p2285_p13), 1, %s1766_s14   ;;  %p2286_p8 = scmp.ne.s32.totalorder (!%p2285_p13), %s2273_s21, 0 }
  0x8f   : > { %393 = sbr.rel (%p2285_p13) target bundleno = 1779 (0x6f3), region = 60  ;;  %s2071_s13 = sshll.u32 (!%p2285_p13), %s2068_s4, 3 }
  0x90   : > { %s396_s11 = scalar_lea.sflag (!%p2285_p13), [#allocation3], %s2068_s4  ;;  %s399_s25 = scalar_lea.vmem (!%p2285_p13), [#allocation2], %s2071_s13 }
  0x96   : > { %1741 = dma.done.wait (%p2286_p8), %s396_s11, 128  }
  0x97   : > { %1743 = vsyncadd (%p2286_p8), %s396_s11, 4294967168  ;;  %s404_s23 = sand.u32 1, %s1889_s19   ;;  %s408_s20 = scalar_lea.vmem [#allocation5], %s2071_s13 }
  0x98   : > { %s405_s10 = scalar_lea.sflag [#allocation6], %s404_s23 }
  0x99   : > { %1745 = dma.done.wait (%p2286_p8), %s405_s10, 128  }
  0x9a   : > { %1747 = vsyncadd (%p2286_p8), %s405_s10, 4294967168  ;;  %p2287_p11 = scmp.eq.s32.totalorder %s1889_s19, 0 }
  0x9c   : > { %1749 = dma.done.wait (%p2287_p11), [#allocation6], 256   ;;  %p2288_p2 = pmov %p2287_p11 }
  0x9e   : > { %1751 = vsyncadd (%p2288_p2), [#allocation6], 4294967040  ;;  %p2289_p12 = pmov %p2288_p2 }
  0x9f   : > { %p2290_p0 = pmov %p2288_p2 }
  0xa0   : > { %1753 = dma.done.wait (%p2289_p12), [#allocation9], 256  }
  0xa1   : > { %1755 = vsyncadd (%p2290_p0), [#allocation9], 4294967040  ;;  %vm462_vm0 = vcmask 261120   ;;  %v492_v0 = vld [vmem:[%s408_s20] sm:$0xff]  ;;  %v461_v1 = vld [vmem:[%s399_s25] sm:$0xff]  ;;  %v1790_v16 = vmov 0.0  }
  0xa2   : > { %v493_v2 = vsel %vm462_vm0, %v492_v0, 0.0  ;;  %v463_v3 = vsel %vm462_vm0, %v461_v1, 0.0  ;;  %v1546_v14 = vld [vmem:[%s2253_s6] sm:$0xff]   ;;  %1380 = vmatprep.subr.bf16.mxu1 %v1790_v16  ;;  %1372 = vmatprep.subr.bf16.mxu0 %v1790_v16  ;;  %v1548_v17 = vld [vmem:[%s2253_s6 + $0x8] sm:$0xff]   ;;  %vm1791_vm1 = vmmov 0   ;;  %vm643_vm2 = vcmask 64512  }
  0xa3   : > { %494 = vadd.xlane.f32.xlu0 %v493_v2  ;;  %v1547_v15 = vld [vmem:[#allocation7] sm:$0xff]   ;;  %1381 = vmatpush3.bf16.msra.mxu1 %v1546_v14  ;;  %v1549_v18 = vld [vmem:[#allocation7 + $0x8] sm:$0xff]   ;;  %s1792_s11 = smov 120   ;;  %s1793_s25 = smov 104   ;;  %vm706_vm3 = vcmask 1043456   ;;  %vm1096_vm4 = vcmask 130048  }
  0xa4   : > { %1373 = vmatpush3.bf16.msra.mxu0 %v1547_v15  ;;  %1382 = vmatprep.subr.bf16.mxu1 %v1790_v16  ;;  %v1321_v26 = vld [vmem:[%s2249_s2] ss:$0 sm:$0xff]  ;;  %s1794_s23 = smov 112   ;;  %s1795_s10 = smov 88   ;;  %vm1098_vm5 = vcmask 195584  }
  0xa5   : > { %1384 = vmatprep.mubr.msk.bf16.mxu1 %vm1791_vm1, %v1790_v16  ;;  %1374 = vmatprep.subr.bf16.mxu0 %v1790_v16  ;;  %v1322_v28 = vld [vmem:[%s2250_s3] ss:$0 sm:$0xff]  ;;  %s1796_s20 = smov 80   ;;  %s1797_s19 = smov 72  }
  0xa6   : > { %1376 = vmatprep.mubr.msk.bf16.mxu0 %vm1791_vm1, %v1790_v16  ;;  %v1327_v37 = vld [vmem:[%s2254_s7] ss:$0 sm:$0xff]  ;;  %s1798_s21 = smov 96   ;;  %s1799_s29 = smov 8  }
  0xa7   : > { %464 = vadd.xlane.f32.xlu0 %v463_v3  ;;  %1383 = vmatpush3.bf16.msra.mxu1 %v1548_v17  ;;  %v1323_v42 = vld [vmem:[%s2252_s5] ss:$0 sm:$0xff]  ;;  %s1800_s30 = smov 16   ;;  %s1801_s12 = smov 24  }
  0xa8   : > { %1394 = vmatprep.subr.bf16.mxu1 %v1790_v16  ;;  %1375 = vmatpush3.bf16.msra.mxu0 %v1549_v18  ;;  %s2291_s17 = sld [smem:[#allocation23_spill]]  ;;  %s1344_s28 = sshll.u32 %s1774_s16, 7 }
  0xa9   : > { %1388 = vmatprep.subr.bf16.mxu0 %v1790_v16  ;;  %s457_s27 = scalar_lea.vmem [#allocation10], %s2071_s13  ;;  %s1169_s16 = scalar_lea.sflag [#allocation4], %s2068_s4 }
  0xaa   : > { %s1183_s9 = sshll.u32 %s457_s27, 4  ;;  %p2293_p6 = scmp.ne.s32.totalorder %s2282_s26, 0  ;;  %s2199_s9 = int_to_ptr.vmem [resolvable:$true] %s1183_s9 }
  0xab   : > { %s1688_s13 = scalar_lea.vmem %s2199_s9, 128 }
  0xac   : > { %p1689_p1 = scmp.ne.s32.totalorder %s2199_s9, %s1688_s13 }
  0xae   : > { %p1690_p10 = pnand %p1689_p1, %p2293_p6 }
  0xb0   : > { %p1691_p3 = pneg %p1690_p10 }
 0x130   : > { %v495_v4 = vpop.xlane.xlu0 %494 }
 0x131   : > { %v496_v5 = vmul.f32 0.03125, %v495_v4 }
 0x133   : > { %v497_v6 = vsub.f32 %v492_v0, %v496_v5 }
 0x134   : > { %v465_v7 = vpop.xlane.xlu0 %464 }
 0x135   : > { %v467_v8 = vmul.f32 0.03125, %v465_v7  ;;  %v498_v9 = vmul.f32 %v497_v6, %v497_v6 }
 0x137   : > { %v468_v10 = vsub.f32 %v461_v1, %v467_v8  ;;  %v499_v11 = vsel %vm462_vm0, %v498_v9, 0.0 }
 0x138   : > { %500 = vadd.xlane.f32.xlu1 %v499_v11 }
 0x139   : > { %v469_v12 = vmul.f32 %v468_v10, %v468_v10 }
 0x13b   : > { %v470_v13 = vsel %vm462_vm0, %v469_v12, 0.0 }
 0x13c   : > { %471 = vadd.xlane.f32.xlu1 %v470_v13 }
 0x1c5   : > { %v501_v19 = vpop.xlane.xlu1 %500 }
 0x1c6   : > { %v502_v20 = vmul.f32 0.03125, %v501_v19 }
 0x1c8   : > { %v503_v21 = vadd.f32 1e-05, %v502_v20 }
 0x1c9   : > { %v472_v22 = vpop.xlane.xlu1 %471 }
 0x1ca   : > { %1552 = vrsqrt.f32 %v503_v21  ;;  %v473_v23 = vmul.f32 0.03125, %v472_v22 }
 0x1cc   : > { %v474_v24 = vadd.f32 1e-05, %v473_v23 }
 0x1ce   : > { %1554 = vrsqrt.f32 %v474_v24 }
 0x1d4   : > { %v1553_v25 = vpop.eup %1552 }
 0x1d5   : > { %v505_v27 = vmul.f32 %v1553_v25, %v497_v6 }
 0x1d7   : > { %v506_v29 = vmul.f32 %v1321_v26, %v505_v27 }
 0x1d8   : > { %v1555_v30 = vpop.eup %1554 }
 0x1d9   : > { %v507_v31 = vadd.f32 %v1322_v28, %v506_v29  ;;  %v476_v32 = vmul.f32 %v1555_v30, %v468_v10 }
 0x1db   : > { %v508_v33 = vpack.c.bf16 %v507_v31, %v507_v31  ;;  %v483_v34 = vmul.f32 %v1321_v26, %v476_v32 }
 0x1dd   : > { %1385 = vmatmul.mubr.msk.bf16.vlgmr.msra.gmra.mrb[0].mxu1 %vm462_vm0, %v508_v33  ;;  %v490_v35 = vadd.f32 %v1322_v28, %v483_v34 }
 0x1de   : > { %1396 = vmatprep.mubr.msk.bf16.mxu1 %vm1791_vm1, %v1790_v16 }
 0x1df   : > { %v491_v36 = vpack.c.bf16 %v490_v35, %v490_v35 }
 0x1e1   : > { %1377 = vmatmul.mubr.msk.bf16.vlgmr.msra.gmra.mrb[0].mxu0 %vm462_vm0, %v491_v36 }
 0x1e2   : > { %1390 = vmatprep.mubr.msk.bf16.mxu0 %vm1791_vm1, %v1790_v16 }
 0x2b0   : > { %v635_v38 = vpop.f32.mrb[0].mxu1 }
 0x2b1   : > { %v636_v39 = vadd.f32 %v1327_v37, %v635_v38  ;;  %v1386_v40 = vpop.f32.mrb[1].mxu1 }
 0x2b2   : > { %v638_v41 = vpop.f32.mrb[2].mxu1 }
 0x2b3   : > { %v2131_v43 = vpack.c.bf16 %v636_v39, %v636_v39  ;;  %v1387_v44 = vpop.f32.mrb[3].mxu1 }
 0x2b4   : > { %v569_v45 = vpop.f32.mrb[0].mxu0 }
 0x2b5   : > { %v570_v46 = vadd.f32 %v1323_v42, %v569_v45  ;;  %755 = vrot.lane.b32.xlu0 %v2131_v43, %s1792_s11  ;;  %v1378_v47 = vpop.f32.mrb[1].mxu0  ;;  %v648_v48 = vsel %vm643_vm2, %v2131_v43, 0 }
 0x2b6   : > { %v572_v49 = vpop.f32.mrb[2].mxu0  ;;  %1389 = vmatpush3.bf16.xpose.msra.mxu0 %v648_v48 }
 0x2b7   : > { %v642_v50 = vpack.c.bf16 %v570_v46, %v570_v46  ;;  %v1379_v51 = vpop.f32.mrb[3].mxu0  ;;  %1400 = vmatprep.subr.bf16.mxu0 %v1790_v16 }
 0x2b9   : > { %975 = vrot.lane.b32.xlu0 %v2131_v43, %s1793_s25  ;;  %753 = vrot.lane.b32.xlu1 %v642_v50, %s1792_s11 }
 0x2bd   : > { %865 = vrot.lane.b32.xlu1 %v2131_v43, %s1794_s23  ;;  %1391 = vmatmul.mubr.msk.bf16.vlgmr.msra.gmra.mrb[4].mxu0 %vm643_vm2, %v642_v50 }
 0x2be   : > { %1402 = vmatprep.mubr.msk.bf16.mxu0 %vm1791_vm1, %v1790_v16 }
 0x2c1   : > { %863 = vrot.lane.b32.xlu1 %v642_v50, %s1794_s23 }
 0x2c5   : > { %973 = vrot.lane.b32.xlu1 %v642_v50, %s1793_s25  ;;  %s2292_s25 = sld [smem:[#allocation24_spill]] }
 0x2cb   : > { %s2197_s23 = scalar_lea.hbm %s2292_s25, %s1344_s28 }
 0x327   : > { %v756_v52 = vpop.permute.xlu0 %755 }
 0x328   : > { %v761_v53 = vsel %vm643_vm2, %v756_v52, 0 }
 0x329   : > { %1401 = vmatpush3.bf16.xpose.msra.mxu0 %v761_v53 }
 0x32a   : > { %1412 = vmatprep.subr.bf16.mxu0 %v1790_v16 }
 0x32b   : > { %v754_v54 = vpop.permute.xlu1 %753  ;;  %v976_v57 = vpop.permute.xlu0 %975 }
 0x32c   : > { %v981_v59 = vsel %vm643_vm2, %v976_v57, 0 }
 0x32f   : > { %v866_v55 = vpop.permute.xlu1 %865 }
 0x330   : > { %v871_v56 = vsel %vm643_vm2, %v866_v55, 0  ;;  %1403 = vmatmul.mubr.msk.bf16.vlgmr.msra.gmra.mrb[8].mxu0 %vm643_vm2, %v754_v54 }
 0x331   : > { %1413 = vmatpush3.bf16.xpose.msra.mxu0 %v871_v56  ;;  %1414 = vmatprep.mubr.msk.bf16.mxu0 %vm1791_vm1, %v1790_v16  ;;  %v1550_v56 = vld [vmem:[#allocation8] sm:$0xff]  }
 0x332   : > { %1424 = vmatprep.subr.bf16.mxu0 %v1790_v16 }
 0x333   : > { %v864_v58 = vpop.permute.xlu1 %863 }
 0x337   : > { %v974_v60 = vpop.permute.xlu1 %973 }
 0x338   : > { %1415 = vmatmul.mubr.msk.bf16.vlgmr.msra.gmra.mrb[12].mxu0 %vm643_vm2, %v864_v58 }
 0x339   : > { %1425 = vmatpush3.bf16.xpose.msra.mxu0 %v981_v59  ;;  %1426 = vmatprep.mubr.msk.bf16.mxu0 %vm1791_vm1, %v1790_v16 }
 0x33a   : > { %1436 = vmatprep.subr.bf16.mxu0 %v1790_v16 }
 0x340   : > { %1427 = vmatmul.mubr.msk.bf16.vlgmr.msra.gmra.mrb[16].mxu0 %vm643_vm2, %v974_v60 }
 0x341   : > { %1440 = vmatprep.mubr.msk.bf16.mxu0 %vm1791_vm1, %v1790_v16  ;;  %1437 = vmatpush3.bf16.msra.mxu0 %v1550_v56 }
 0x342   : > { %1438 = vmatprep.subr.bf16.mxu0 %v1790_v16 }
 0x390   : > { %v684_v61 = vpop.f32.mrb[4].mxu0 }
 0x391   : > { %v1392_v62 = vpop.f32.mrb[5].mxu0  ;;  %v690_v63 = vsel %vm643_vm2, %v684_v61, -inf }
 0x392   : > { %691 = vmax.xlane.f32.xlu0 %v690_v63  ;;  %v687_v0 = vpop.f32.mrb[6].mxu0 }
 0x393   : > { %v1393_v1 = vpop.f32.mrb[7].mxu0  ;;  %v1551_v0 = vld [vmem:[#allocation8 + $0x8] sm:$0xff]  }
 0x394   : > { %1439 = vmatpush3.bf16.msra.mxu0 %v1551_v0 }
 0x403   : > { %v797_v2 = vpop.f32.mrb[8].mxu0 }
 0x404   : > { %v1404_v3 = vpop.f32.mrb[9].mxu0  ;;  %v803_v4 = vsel %vm643_vm2, %v797_v2, -inf }
 0x405   : > { %804 = vmax.xlane.f32.xlu1 %v803_v4  ;;  %v800_v5 = vpop.f32.mrb[10].mxu0 }
 0x406   : > { %v1405_v6 = vpop.f32.mrb[11].mxu0 }
 0x40b   : > { %v907_v7 = vpop.f32.mrb[12].mxu0 }
 0x40c   : > { %v1416_v8 = vpop.f32.mrb[13].mxu0  ;;  %v913_v9 = vsel %vm643_vm2, %v907_v7, -inf }
 0x40d   : > { %914 = vmax.xlane.f32.xlu0 %v913_v9  ;;  %v910_v10 = vpop.f32.mrb[14].mxu0 }
 0x40e   : > { %v1417_v11 = vpop.f32.mrb[15].mxu0 }
 0x413   : > { %v1017_v12 = vpop.f32.mrb[16].mxu0 }
 0x414   : > { %v1428_v13 = vpop.f32.mrb[17].mxu0  ;;  %v1023_v14 = vsel %vm643_vm2, %v1017_v12, -inf }
 0x415   : > { %1024 = vmax.xlane.f32.xlu0 %v1023_v14  ;;  %v1020_v15 = vpop.f32.mrb[18].mxu0 }
 0x416   : > { %813 = vrot.lane.b32.xlu1 %v2131_v43, %s1795_s10  ;;  %v1429_v17 = vpop.f32.mrb[19].mxu0  ;;  %s1802_s10 = smov [#allocation10]  }
 0x41a   : > { %923 = vrot.lane.b32.xlu1 %v2131_v43, %s1796_s20  ;;  %s1692_s20 = sshll.u32 %s1802_s10, 4  ;;  %s1693_s20 = int_to_ptr.vmem [resolvable:$false] %s1692_s20 }
 0x41b   : > { %p1695_p4 = scmp.lt.s32.totalorder %s2199_s9, %s1693_s20 }
 0x41e   : > { %1033 = vrot.lane.b32.xlu1 %v2131_v43, %s1797_s19  ;;  %s1694_s19 = scalar_lea.vmem %s1693_s20, 256 }
 0x41f   : > { %v692_v18 = vpop.xlane.xlu0 %691  ;;  %p1696_p9 = scmp.lt.s32.totalorder %s1694_s19, %s1688_s13 }
 0x420   : > { %v693_v21 = vsub.f32 %v684_v61, %v692_v18 }
 0x421   : > { %p1697_p5 = por %p1696_p9, %p1695_p4 }
 0x422   : > { %v694_v23 = vmul.f32 1.442695, %v693_v21 }
 0x423   : > { %p1698_p7 = pnand %p1697_p5, %p1691_p3 }
 0x42b   : > { %701 = vrot.lane.b32.xlu0 %v2131_v43, %s1798_s21 }
 0x492   : > { %v805_v19 = vpop.xlane.xlu1 %804 }
 0x493   : > { %v806_v20 = vsub.f32 %v797_v2, %v805_v19 }
 0x495   : > { %v807_v22 = vmul.f32 1.442695, %v806_v20 }
 0x496   : > { %v814_v35 = vpop.permute.xlu1 %813 }
 0x497   : > { %1556 = vpow2.f32 %v807_v22  ;;  %v819_v39 = vsel %vm706_vm3, %v814_v35, 0 }
 0x498   : > { %1558 = vpow2.f32 %v694_v23  ;;  %v1339_v23 = vld [vmem:[%s2291_s17] ss:$0 sm:$0xff] }
 0x49a   : > { %v915_v24 = vpop.xlane.xlu0 %914  ;;  %v924_v40 = vpop.permute.xlu1 %923 }
 0x49b   : > { %v916_v25 = vsub.f32 %v907_v7, %v915_v24  ;;  %v929_v44 = vsel %vm706_vm3, %v924_v40, 0 }
 0x49d   : > { %v917_v26 = vmul.f32 1.442695, %v916_v25 }
 0x49e   : > { %v1034_v46 = vpop.permute.xlu1 %1033 }
 0x49f   : > { %1560 = vpow2.f32 %v917_v26  ;;  %v1039_v48 = vsel %vm706_vm3, %v1034_v46, 0 }
 0x4a1   : > { %v1557_v27 = vpop.eup %1556 }
 0x4a2   : > { %v1025_v28 = vpop.xlane.xlu0 %1024  ;;  %v809_v29 = vsel %vm643_vm2, %v1557_v27, 0.0  ;;  %v1559_v32 = vpop.eup %1558  ;;  %v812_v42 = vpack.c.bf16 %v1557_v27, %v1557_v27 }
 0x4a3   : > { %v1026_v30 = vsub.f32 %v1017_v12, %v1025_v28  ;;  %810 = vadd.xlane.f32.xlu0 %v809_v29  ;;  %v699_v37 = vpack.c.bf16 %v1559_v32, %v1559_v32  ;;  %v696_v45 = vsel %vm643_vm2, %v1559_v32, 0.0 }
 0x4a5   : > { %v1027_v31 = vmul.f32 1.442695, %v1026_v30 }
 0x4a6   : > { %v702_v33 = vpop.permute.xlu0 %701 }
 0x4a7   : > { %1562 = vpow2.f32 %v1027_v31  ;;  %v708_v34 = vsel %vm706_vm3, %v702_v33, 0 }
 0x4a8   : > { %1395 = vmatpush3.bf16.msra.mxu1 %v708_v34 }
 0x4a9   : > { %v1561_v36 = vpop.eup %1560  ;;  %1406 = vmatprep.subr.bf16.mxu1 %v1790_v16 }
 0x4aa   : > { %v919_v38 = vsel %vm643_vm2, %v1561_v36, 0.0  ;;  %v922_v47 = vpack.c.bf16 %v1561_v36, %v1561_v36 }
 0x4ab   : > { %920 = vadd.xlane.f32.xlu1 %v919_v38  ;;  %1397 = vmatmul.mubr.msk.bf16.vlgmr.msra.gmra.mrb[4].mxu1 %vm643_vm2, %v699_v37 }
 0x4ac   : > { %1407 = vmatpush3.bf16.msra.mxu1 %v819_v39  ;;  %1408 = vmatprep.mubr.msk.bf16.mxu1 %vm1791_vm1, %v1790_v16 }
 0x4ad   : > { %1418 = vmatprep.subr.bf16.mxu1 %v1790_v16 }
 0x4b1   : > { %v1563_v41 = vpop.eup %1562 }
 0x4b2   : > { %v1029_v43 = vsel %vm643_vm2, %v1563_v41, 0.0  ;;  %v1032_v49 = vpack.c.bf16 %v1563_v41, %v1563_v41 }
 0x4b3   : > { %1030 = vadd.xlane.f32.xlu0 %v1029_v43  ;;  %1409 = vmatmul.mubr.msk.bf16.vlgmr.msra.gmra.mrb[8].mxu1 %vm643_vm2, %v812_v42 }
 0x4b4   : > { %1419 = vmatpush3.bf16.msra.mxu1 %v929_v44  ;;  %1420 = vmatprep.mubr.msk.bf16.mxu1 %vm1791_vm1, %v1790_v16 }
 0x4b5   : > { %1430 = vmatprep.subr.bf16.mxu1 %v1790_v16 }
 0x4b7   : > { %697 = vadd.xlane.f32.xlu0 %v696_v45 }
 0x4bb   : > { %1421 = vmatmul.mubr.msk.bf16.vlgmr.msra.gmra.mrb[12].mxu1 %vm643_vm2, %v922_v47 }
 0x4bc   : > { %1431 = vmatpush3.bf16.msra.mxu1 %v1039_v48  ;;  %1432 = vmatprep.mubr.msk.bf16.mxu1 %vm1791_vm1, %v1790_v16 }
 0x4c3   : > { %1433 = vmatmul.mubr.msk.bf16.vlgmr.msra.gmra.mrb[16].mxu1 %vm643_vm2, %v1032_v49 }
 0x530   : > { %v811_v50 = vpop.xlane.xlu0 %810 }
 0x531   : > { %1564 = vrcp.f32 %v811_v50 }
 0x538   : > { %v921_v54 = vpop.xlane.xlu1 %920 }
 0x539   : > { %1566 = vrcp.f32 %v921_v54 }
 0x53b   : > { %v1565_v57 = vpop.eup %1564 }
 0x540   : > { %v1031_v62 = vpop.xlane.xlu0 %1030 }
 0x541   : > { %1568 = vrcp.f32 %v1031_v62 }
 0x543   : > { %v1567_v1 = vpop.eup %1566 }
 0x544   : > { %v698_v12 = vpop.xlane.xlu0 %697 }
 0x545   : > { %1570 = vrcp.f32 %v698_v12 }
 0x54b   : > { %v1569_v7 = vpop.eup %1568 }
 0x54f   : > { %v1571_v13 = vpop.eup %1570 }
 0x57e   : > { %v744_v51 = vpop.f32.mrb[4].mxu1 }
 0x57f   : > { %v1398_v52 = vpop.f32.mrb[5].mxu1  ;;  %v751_v17 = vmul.f32 %v1571_v13, %v744_v51 }
 0x580   : > { %v747_v53 = vpop.f32.mrb[6].mxu1 }
 0x581   : > { %v1399_v55 = vpop.f32.mrb[7].mxu1 }
 0x586   : > { %v855_v58 = vpop.f32.mrb[8].mxu1 }
 0x587   : > { %v862_v59 = vmul.f32 %v1565_v57, %v855_v58  ;;  %v1410_v60 = vpop.f32.mrb[9].mxu1 }
 0x588   : > { %v858_v61 = vpop.f32.mrb[10].mxu1 }
 0x589   : > { %v1411_v63 = vpop.f32.mrb[11].mxu1  ;;  %1084 = vrot.lane.b32.xlu0 %v862_v59, %s1799_s29 }
 0x58e   : > { %v965_v2 = vpop.f32.mrb[12].mxu1 }
 0x58f   : > { %v972_v3 = vmul.f32 %v1567_v1, %v965_v2  ;;  %v1422_v4 = vpop.f32.mrb[13].mxu1 }
 0x590   : > { %v968_v5 = vpop.f32.mrb[14].mxu1 }
 0x591   : > { %1088 = vrot.lane.b32.xlu1 %v972_v3, %s1800_s30  ;;  %v1423_v6 = vpop.f32.mrb[15].mxu1 }
 0x596   : > { %v1075_v8 = vpop.f32.mrb[16].mxu1 }
 0x597   : > { %v1082_v9 = vmul.f32 %v1569_v7, %v1075_v8  ;;  %v1434_v16 = vpop.f32.mrb[17].mxu1 }
 0x598   : > { %v1078_v10 = vpop.f32.mrb[18].mxu1 }
 0x599   : > { %v1435_v11 = vpop.f32.mrb[19].mxu1  ;;  %1092 = vrot.lane.b32.xlu1 %v1082_v9, %s1801_s12 }
 0x5fb   : > { %v1085_v14 = vpop.permute.xlu0 %1084 }
 0x5fc   : > { %v1095_v18 = vsel %vm643_vm2, %v751_v17, %v1085_v14 }
 0x603   : > { %v1089_v15 = vpop.permute.xlu1 %1088 }
 0x604   : > { %v1097_v19 = vsel %vm1096_vm4, %v1095_v18, %v1089_v15 }
 0x60b   : > { %v1093_v20 = vpop.permute.xlu1 %1092 }
 0x60c   : > { %v1099_v21 = vsel %vm1098_vm5, %v1097_v19, %v1093_v20 }
 0x60d   : > { %v1100_v22 = vpack.c.bf16 %v1099_v21, %v1099_v21 }
 0x60f   : > { %1441 = vmatmul.mubr.msk.bf16.vlgmr.msra.gmra.mrb[20].mxu0 %vm462_vm0, %v1100_v22 }
 0x6e2   : > { %v1161_v24 = vpop.f32.mrb[20].mxu0 }
 0x6e3   : > { %v1162_v25 = vadd.f32 %v1339_v23, %v1161_v24  ;;  %v1442_v26 = vpop.f32.mrb[21].mxu0 }
 0x6e4   : > { %v1164_v27 = vpop.f32.mrb[22].mxu0 }
 0x6e5   : > { %v1443_v28 = vpop.f32.mrb[23].mxu0  ;;  %1167 = vst.msk [vmem:[%s457_s27] sm:$0xff] %vm462_vm0, %v1162_v25 }
 0x6e6   : > { %1701 = shalt.err (!%p1698_p7)
}
 0x6e7   : > { %s1702_s4 = scalar_lea.hbm %s2197_s23, 128  ;;  %s1706_s30 = scalar_lea.hbm %s2292_s25, 256 }
 0x6e8   : > { %p1703_p13 = scmp.ne.s32.totalorder %s2197_s23, %s1702_s4  ;;  %p1707_p2 = scmp.lt.u32.totalorder %s2197_s23, %s2292_s25 }
 0x6e9   : > { %p1708_p12 = scmp.lt.u32.totalorder %s1706_s30, %s1702_s4  ;;  %p1710_p1 = scmp.lt.u32.totalorder %s1702_s4, %s2197_s23 }
 0x6ea   : > { %p1704_p8 = pnand %p1703_p13, %p2293_p6 }
 0x6eb   : > { %p1709_p0 = por %p1708_p12, %p1707_p2 }
 0x6ec   : > { %p1705_p11 = pneg %p1704_p8 }
 0x6ed   : > { %p1711_p10 = por %p1710_p1, %p1709_p0 }
 0x6ef   : > { %p1712_p3 = pnand %p1711_p10, %p1705_p11 }
 0x6f1   : > { %1715 = shalt.err (!%p1712_p3)
}
 0x6f2   : > { %1456 = dma.vmem_to_hbm [thread:$0]  (%p2293_p6), %s2199_s9, 128, %s2197_s23, %s1169_s16  }
 0x6f3 PF: > { %s2294_s22 = sld [smem:[#allocation16_spill]]  ;;  %s2295_s17 = sld [smem:[#allocation18_spill]] }
 0x6f4   : > { %p2297_p9 = scmp.ge.s32.totalorder %s1782_s18, 2 }
 0x6f9   : > { %s1195_s28 = sand.u32 1, %s2294_s22   ;;  %p2296_p4 = scmp.ne.s32.totalorder %s2295_s17, 0 }
 0x6fa   : > { %s1196_s27 = scalar_lea.sflag [#allocation4], %s1195_s28 }
 0x6fb   : > { %p1473_p5 = pnand %p2297_p9, %p2296_p4 }
 0x6fd   : > { %1757 = dma.done.wait (!%p1473_p5), %s1196_s27, 128  }
 0x6fe   : > { %1759 = vsyncadd (!%p1473_p5), %s1196_s27, 4294967168  ;;  %s30_s18 = sadd.s32 1, %s1782_s18   ;;  %s2298_s26 = sld [smem:[#allocation20_spill]] }
 0x6ff   : > { %p27_p7 = scmp.ge.s32.totalorder %s30_s18, 4   ;;  %s2299_s16 = sld [smem:[#allocation17_spill]] }
 0x700   : > { %s2300_s17 = sld [smem:[#allocation19_spill]]  ;;  %s2301_s13 = smov %s1766_s14 }
 0x701   : > { %s2302_s14 = smov %s1770_s15  ;;  %29 = sbr.rel (!%p27_p7) target bundleno = 14 (0xe), region = 126 }
 0x704   : > { %s2303_s15 = smov %s2298_s26 }
 0x708   :  { %1201 = vsyncpa [#allocation3], 1 }
 0x709   :  { %1203 = vsyncpa [#allocation3 + $0x1], 1 }
 0x70a   :  { %1204 = vsyncpa [#allocation6], 1 }
 0x70b   :  { %1206 = vsyncpa [#allocation6 + $0x1], 1 }
 0x70c   :  { %1207 = vsyncpa [#allocation9], 1 }
 0x70d   :  { %1208 = vsyncpa [#allocation4], 1 }
 0x70e   :  { %1210 = vsyncpa [#allocation4 + $0x1], 1 }

</bundles_post_ra>
